<compile_context>
chip_gen: v6e
topology: v6e:2x2x1
jax: 0.10.0
libtpu: 0.0.40
codegen_flags: <defaults>
</compile_context>

<pallas_src>
import jax
import jax.numpy as jnp
from jax.experimental import pallas as pl
from jax.experimental.pallas import tpu as pltpu

# --- small, module-consistent shapes -----------------------------------------
B, CIN, H, W = 2, 4, 16, 16          # input images, NCHW = (2, 4, 16, 16)
COUT = 8                             # synthetic backbone conv channels
KH = KW = 3                          # 3x3 conv, stride 1, same padding
N_CLASSES = 32                       # backbone feature width (module default 100)
EMB = 64                             # embedding_size (module default 64)
HW = H * W                           # 256 spatial positions per image
S = B * HW                           # 512 spatial positions over the batch
K36 = KH * KW * CIN                  # im2col contraction width = 36


def _fused_kernel(pat_ref, w36_ref, bconv_ref, pool_ref, wfused_ref,
                  bfused_ref, out_ref):
    """Single invocation over the whole batch. Everything lane-dense.

    pat_ref   : (36, S)    transposed im2col patches (lane dim = S = 512)
    w36_ref   : (COUT, 36) conv weight, im2col layout, transposed
    bconv_ref : (COUT, 1)
    pool_ref  : (S, B)     block-averaging selector, 1/HW folded in
    wfused_ref: (EMB, COUT) == (whead @ wemb).T   (head + embedding fused)
    bfused_ref: (EMB, 1)    == (bhead @ wemb + bemb).T
    out_ref   : (EMB, B)    transposed embeddings (wrapper transposes back)
    """
    # ---- 3x3 same conv: ONE im2col MXU dot, output transposed (8, 512) -----
    conv_t = jnp.dot(w36_ref[...], pat_ref[...],
                     preferred_element_type=jnp.float32)          # (COUT, S)
    relu_t = jnp.maximum(conv_t + bconv_ref[...], 0.0)            # lane-dense

    # ---- global average pool as an MXU dot against the hoisted selector ----
    pooled_t = jnp.dot(relu_t, pool_ref[...],
                       preferred_element_type=jnp.float32)        # (COUT, B)

    # ---- x.view(B, -1) is a no-op; fused head + embedding Linear -----------
    out_ref[...] = (jnp.dot(wfused_ref[...], pooled_t,
                            preferred_element_type=jnp.float32)
                    + bfused_ref[...])                            # (EMB, B)


@jax.jit
def embedding_model_conv_forward(x_nchw, params):
    """Forward pass of EmbeddingModelConv. Returns (B, EMB) embeddings."""
    wconv, bconv, whead, bhead, wemb, bemb = params

    # --- layout plumbing + im2col, all in the wrapper (tiny, fused under jit)
    x = jnp.transpose(x_nchw, (0, 2, 3, 1)).astype(jnp.float32)   # NHWC
    xp = jnp.pad(x, ((0, 0), (1, 1), (1, 1), (0, 0)))             # 1-px zero pad
    taps = [xp[:, dh:dh + H, dw:dw + W, :].reshape(S, CIN)
            for dh in range(KH) for dw in range(KW)]
    patches_t = jnp.concatenate(taps, axis=1).T                   # (36, S)

    # --- weight prep hoisted out of the kernel (exact algebra) --------------
    w36_t = wconv.reshape(K36, COUT).T                            # (COUT, 36)
    bconv_col = bconv.reshape(COUT, 1)
    wfused_t = (whead @ wemb).T                                   # (EMB, COUT)
    bfused_col = (bhead @ wemb + bemb).reshape(EMB, 1)            # (EMB, 1)

    # --- pooling selector hoisted out of the kernel, 1/HW folded in ---------
    pool_t = ((jnp.arange(S)[:, None] // HW) == jnp.arange(B)[None, :]
              ).astype(jnp.float32) / HW                          # (S, B)

    out_t = pl.pallas_call(
        _fused_kernel,
        out_shape=jax.ShapeDtypeStruct((EMB, B), jnp.float32),
        grid_spec=pltpu.PrefetchScalarGridSpec(
            num_scalar_prefetch=0,
            grid=(1,),                                            # one step, whole batch
            in_specs=[
                pl.BlockSpec((K36, S),      lambda i: (0, 0)),
                pl.BlockSpec((COUT, K36),   lambda i: (0, 0)),
                pl.BlockSpec((COUT, 1),     lambda i: (0, 0)),
                pl.BlockSpec((S, B),        lambda i: (0, 0)),
                pl.BlockSpec((EMB, COUT),   lambda i: (0, 0)),
                pl.BlockSpec((EMB, 1),      lambda i: (0, 0)),
            ],
            out_specs=pl.BlockSpec((EMB, B), lambda i: (0, 0)),
        ),
        compiler_params=pltpu.CompilerParams(
            dimension_semantics=("arbitrary",)),
    )(patches_t, w36_t, bconv_col, pool_t, wfused_t, bfused_col)

    return out_t.T                                                # (B, EMB)


def _reference_forward(x_nchw, params):
    """Plain-JAX reference of the same forward, for verification."""
    wconv, bconv, whead, bhead, wemb, bemb = params
    x = jnp.transpose(x_nchw, (0, 2, 3, 1)).astype(jnp.float32)
    conv = jax.lax.conv_general_dilated(
        x, wconv, window_strides=(1, 1), padding="SAME",
        dimension_numbers=("NHWC", "HWIO", "NHWC")) + bconv
    conv = jnp.maximum(conv, 0.0)
    pooled = conv.mean(axis=(1, 2))                 # (B, COUT)
    feat = pooled @ whead + bhead                   # (B, N_CLASSES)
    return feat @ wemb + bemb                       # (B, EMB)


def _init_params(key):
    ks = jax.random.split(key, 6)
    wconv = 0.1 * jax.random.normal(ks[0], (KH, KW, CIN, COUT), jnp.float32)
    bconv = 0.1 * jax.random.normal(ks[1], (1, COUT), jnp.float32)
    whead = 0.1 * jax.random.normal(ks[2], (COUT, N_CLASSES), jnp.float32)
    bhead = 0.1 * jax.random.normal(ks[3], (1, N_CLASSES), jnp.float32)
    wemb = 0.1 * jax.random.normal(ks[4], (N_CLASSES, EMB), jnp.float32)
    bemb = 0.1 * jax.random.normal(ks[5], (1, EMB), jnp.float32)
    return (wconv, bconv, whead, bhead, wemb, bemb)


if __name__ == "__main__":
    key = jax.random.PRNGKey(0)
    k_x, k_p = jax.random.split(key)
    x = jax.random.normal(k_x, (B, CIN, H, W), jnp.float32)     # NCHW input
    params = _init_params(k_p)

    out = jax.block_until_ready(embedding_model_conv_forward(x, params))
    ref = jax.block_until_ready(_reference_forward(x, params))

    assert out.shape == (B, EMB)
    assert jnp.allclose(out, ref, rtol=1e-4, atol=1e-4), "mismatch vs reference"

    print("KERNEL_OK")
</pallas_src>

<mosaic_0001>
module attributes {stable_mosaic.version = 11 : i64} {
  func.func @_fused_kernel(%arg0: i32, %arg1: memref<36x512xf32, #tpu.memory_space<vmem>>, %arg2: memref<8x36xf32, #tpu.memory_space<vmem>>, %arg3: memref<8x1xf32, #tpu.memory_space<vmem>>, %arg4: memref<512x2xf32, #tpu.memory_space<vmem>>, %arg5: memref<64x8xf32, #tpu.memory_space<vmem>>, %arg6: memref<64x1xf32, #tpu.memory_space<vmem>>, %arg7: memref<64x2xf32, #tpu.memory_space<vmem>>) attributes {dimension_semantics = [#tpu.dimension_semantics<arbitrary>], iteration_bounds = array<i64: 1>, scalar_prefetch = 0 : i64, scratch_operands = 0 : i64, tpu.core_type = #tpu.core_type<tc>, window_params = [{pipeline_mode = #tpu.pipeline_mode<synchronous>, transform_indices = @transform_0, window_bounds = array<i64: 36, 512>}, {pipeline_mode = #tpu.pipeline_mode<synchronous>, transform_indices = @transform_1, window_bounds = array<i64: 8, 36>}, {pipeline_mode = #tpu.pipeline_mode<synchronous>, transform_indices = @transform_2, window_bounds = array<i64: 8, 1>}, {pipeline_mode = #tpu.pipeline_mode<synchronous>, transform_indices = @transform_3, window_bounds = array<i64: 512, 2>}, {pipeline_mode = #tpu.pipeline_mode<synchronous>, transform_indices = @transform_4, window_bounds = array<i64: 64, 8>}, {pipeline_mode = #tpu.pipeline_mode<synchronous>, transform_indices = @transform_5, window_bounds = array<i64: 64, 1>}, {pipeline_mode = #tpu.pipeline_mode<synchronous>, transform_indices = @transform_6, window_bounds = array<i64: 64, 2>}]} {
    %c0 = arith.constant 0 : index
    %c0_0 = arith.constant 0 : index
    %0 = vector.load %arg2[%c0, %c0_0] : memref<8x36xf32, #tpu.memory_space<vmem>>, vector<8x36xf32>
    %c0_1 = arith.constant 0 : index
    %c0_2 = arith.constant 0 : index
    %1 = vector.load %arg1[%c0_1, %c0_2] : memref<36x512xf32, #tpu.memory_space<vmem>>, vector<36x512xf32>
    %cst = arith.constant dense<0.000000e+00> : vector<8x512xf32>
    %2 = tpu.matmul %0, %1, %cst {dimension_numbers = #tpu.dot_dimension_numbers<[1], [0], [0], [1], [0, 0, 1, 1], [], []>} : vector<8x36xf32>, vector<36x512xf32>, vector<8x512xf32> -> vector<8x512xf32>
    %c0_3 = arith.constant 0 : index
    %c0_4 = arith.constant 0 : index
    %3 = vector.load %arg3[%c0_3, %c0_4] : memref<8x1xf32, #tpu.memory_space<vmem>>, vector<8x1xf32>
    %4 = vector.broadcast %3 : vector<8x1xf32> to vector<8x512xf32>
    %5 = arith.addf %2, %4 : vector<8x512xf32>
    %cst_5 = arith.constant 0.000000e+00 : f32
    %6 = vector.broadcast %cst_5 : f32 to vector<8x512xf32>
    %7 = arith.maximumf %5, %6 : vector<8x512xf32>
    %c0_6 = arith.constant 0 : index
    %c0_7 = arith.constant 0 : index
    %8 = vector.load %arg4[%c0_6, %c0_7] : memref<512x2xf32, #tpu.memory_space<vmem>>, vector<512x2xf32>
    %cst_8 = arith.constant dense<0.000000e+00> : vector<8x2xf32>
    %9 = tpu.matmul %7, %8, %cst_8 {dimension_numbers = #tpu.dot_dimension_numbers<[1], [0], [0], [1], [0, 0, 1, 1], [], []>} : vector<8x512xf32>, vector<512x2xf32>, vector<8x2xf32> -> vector<8x2xf32>
    %c0_9 = arith.constant 0 : index
    %c0_10 = arith.constant 0 : index
    %10 = vector.load %arg5[%c0_9, %c0_10] : memref<64x8xf32, #tpu.memory_space<vmem>>, vector<64x8xf32>
    %cst_11 = arith.constant dense<0.000000e+00> : vector<64x2xf32>
    %11 = tpu.matmul %10, %9, %cst_11 {dimension_numbers = #tpu.dot_dimension_numbers<[1], [0], [0], [1], [0, 0, 1, 1], [], []>} : vector<64x8xf32>, vector<8x2xf32>, vector<64x2xf32> -> vector<64x2xf32>
    %c0_12 = arith.constant 0 : index
    %c0_13 = arith.constant 0 : index
    %12 = vector.load %arg6[%c0_12, %c0_13] : memref<64x1xf32, #tpu.memory_space<vmem>>, vector<64x1xf32>
    %13 = vector.broadcast %12 : vector<64x1xf32> to vector<64x2xf32>
    %14 = arith.addf %11, %13 : vector<64x2xf32>
    %c0_14 = arith.constant 0 : index
    %c0_15 = arith.constant 0 : index
    %15 = vector.load %arg7[%c0_14, %c0_15] : memref<64x2xf32, #tpu.memory_space<vmem>>, vector<64x2xf32>
    tpu.vector_store %arg7[%c0_14, %c0_15], %14 {strides = array<i32>} : memref<64x2xf32, #tpu.memory_space<vmem>>, vector<64x2xf32>,
    return
  }
  func.func @transform_0(%arg0: i32) -> (i32, i32) {
    %c0_i32 = arith.constant 0 : i32
    %c0_i32_0 = arith.constant 0 : i32
    %c0_i32_1 = arith.constant 0 : i32
    return %c0_i32, %c0_i32_0 : i32, i32
  }
  func.func @transform_1(%arg0: i32) -> (i32, i32) {
    %c0_i32 = arith.constant 0 : i32
    %c0_i32_0 = arith.constant 0 : i32
    %c0_i32_1 = arith.constant 0 : i32
    return %c0_i32, %c0_i32_0 : i32, i32
  }
  func.func @transform_2(%arg0: i32) -> (i32, i32) {
    %c0_i32 = arith.constant 0 : i32
    %c0_i32_0 = arith.constant 0 : i32
    %c0_i32_1 = arith.constant 0 : i32
    return %c0_i32, %c0_i32_0 : i32, i32
  }
  func.func @transform_3(%arg0: i32) -> (i32, i32) {
    %c0_i32 = arith.constant 0 : i32
    %c0_i32_0 = arith.constant 0 : i32
    %c0_i32_1 = arith.constant 0 : i32
    return %c0_i32, %c0_i32_0 : i32, i32
  }
  func.func @transform_4(%arg0: i32) -> (i32, i32) {
    %c0_i32 = arith.constant 0 : i32
    %c0_i32_0 = arith.constant 0 : i32
    %c0_i32_1 = arith.constant 0 : i32
    return %c0_i32, %c0_i32_0 : i32, i32
  }
  func.func @transform_5(%arg0: i32) -> (i32, i32) {
    %c0_i32 = arith.constant 0 : i32
    %c0_i32_0 = arith.constant 0 : i32
    %c0_i32_1 = arith.constant 0 : i32
    return %c0_i32, %c0_i32_0 : i32, i32
  }
  func.func @transform_6(%arg0: i32) -> (i32, i32) {
    %c0_i32 = arith.constant 0 : i32
    %c0_i32_0 = arith.constant 0 : i32
    %c0_i32_1 = arith.constant 0 : i32
    return %c0_i32, %c0_i32_0 : i32, i32
  }
}

</mosaic_0001>

<bundles_post_ra>
// kernel: embedding_model_conv_forward.1
= control target key start
LH: loop header
LB: loop body
LE: loop exit
PB: predicated region body
PF: predicated region fallthrough
CT: control target
= control target key end

     0   :  { %vm54_vm0 = vcmask 1043456   ;;  %v729_v3 = vmov 0.0   ;;  %vm50_vm1 = vcmask 293888   ;;  %v730_v27 = vmov 0   ;;  %s1114_s0 = inlined_call_operand.vmem [shape: f32[36,512], index: 0, kind: input, shape index: {}]   ;;  %s1115_s1 = inlined_call_operand.vmem [shape: f32[8,36], index: 1, kind: input, shape index: {}]   ;;  %s1116_s3 = inlined_call_operand.vmem [shape: f32[512,2], index: 3, kind: input, shape index: {}]   ;;  %s1117_s2 = inlined_call_operand.vmem [shape: f32[8,1], index: 2, kind: input, shape index: {}]   ;;  %s1118_s5 = inlined_call_operand.vmem [shape: f32[64,1], index: 5, kind: input, shape index: {}]   ;;  %s1119_s4 = inlined_call_operand.vmem [shape: f32[64,8], index: 4, kind: input, shape index: {}]   ;;  %s1120_s6 = inlined_call_operand.vmem [shape: f32[64,2], index: 6, kind: output, shape index: {}]  }
   0x1   :  { %v41_v0 = vld [vmem:[%s1114_s0 + $0x88] sm:$0xf]  ;;  %v43_v1 = vld [vmem:[%s1114_s0 + $0x98] sm:$0xf]  ;;  %v40_v2 = vld [vmem:[%s1114_s0 + $0x80] sm:$0xf]  ;;  %131 = vmatprep.mubr.f32.mxu0 %v729_v3  ;;  %202 = vmatprep.mubr.f32.mxu1 %v729_v3 }
   0x2   :  { %616 = vmatprep.subr.msk.mxu0 %vm54_vm0, %v41_v0  ;;  %619 = vmatprep.subr.msk.mxu1 %vm54_vm0, %v43_v1  ;;  %v42_v4 = vld [vmem:[%s1114_s0 + $0x90] sm:$0xf]  ;;  %v37_v5 = vld [vmem:[%s1114_s0 + $0x68] sm:$0xff]  ;;  %v39_v6 = vld [vmem:[%s1114_s0 + $0x78] sm:$0xff]  ;;  %vm473_vm2 = vcmask 64512   ;;  %vm603_vm3 = vcmask 15360  }
   0x3   :  { %617 = vmatpush1.msk.msra.mxu0 %vm54_vm0, %v40_v2  ;;  %620 = vmatpush1.msk.msra.mxu1 %vm54_vm0, %v42_v4  ;;  %v36_v7 = vld [vmem:[%s1114_s0 + $0x60] sm:$0xff]  ;;  %v38_v8 = vld [vmem:[%s1114_s0 + $0x70] sm:$0xff]  ;;  %v33_v9 = vld [vmem:[%s1114_s0 + $0x48] sm:$0xff] }
   0x4   :  { %91 = vmatprep.subr.mxu0 %v37_v5  ;;  %162 = vmatprep.subr.mxu1 %v39_v6  ;;  %v35_v10 = vld [vmem:[%s1114_s0 + $0x58] sm:$0xff]  ;;  %v32_v11 = vld [vmem:[%s1114_s0 + $0x40] sm:$0xff]  ;;  %v34_v12 = vld [vmem:[%s1114_s0 + $0x50] sm:$0xff] }
   0x5   :  { %92 = vmatpush1.msra.mxu0 %v36_v7  ;;  %163 = vmatpush1.msra.mxu1 %v38_v8  ;;  %v29_v13 = vld [vmem:[%s1114_s0 + $0x28] sm:$0xff]  ;;  %v31_v14 = vld [vmem:[%s1114_s0 + $0x38] sm:$0xff]  ;;  %v28_v15 = vld [vmem:[%s1114_s0 + $0x20] sm:$0xff] }
   0x6   :  { %93 = vmatprep.subr.mxu0 %v33_v9  ;;  %164 = vmatprep.subr.mxu1 %v35_v10  ;;  %v30_v16 = vld [vmem:[%s1114_s0 + $0x30] sm:$0xff]  ;;  %v25_v17 = vld [vmem:[%s1114_s0 + $0x8] sm:$0xff]  ;;  %v27_v18 = vld [vmem:[%s1114_s0 + $0x18] sm:$0xff] }
   0x7   :  { %94 = vmatpush1.msra.mxu0 %v32_v11  ;;  %165 = vmatpush1.msra.mxu1 %v34_v12  ;;  %v24_v19 = vld [vmem:[%s1114_s0] sm:$0xff]  ;;  %v26_v20 = vld [vmem:[%s1114_s0 + $0x10] sm:$0xff]  ;;  %v244_v22 = vld [vmem:[%s1116_s3 + $0xf8] sm:$0xff] }
   0x8   :  { %95 = vmatprep.subr.mxu0 %v29_v13  ;;  %166 = vmatprep.subr.mxu1 %v31_v14  ;;  %v23_v21 = vld [vmem:[%s1115_s1] sm:$0xff]  ;;  %v276_v24 = vld [vmem:[%s1116_s3 + $0x1f8] sm:$0xff]  ;;  %v243_v28 = vld [vmem:[%s1116_s3 + $0xf0] sm:$0xff] }
   0x9   :  { %96 = vmatpush1.msra.mxu0 %v28_v15  ;;  %167 = vmatpush1.msra.mxu1 %v30_v16  ;;  %v44_v23 = vld [vmem:[%s1117_s2] sm:$0xff]  ;;  %v228_v25 = vld [vmem:[%s1116_s3 + $0x78] sm:$0xff]  ;;  %v275_v29 = vld [vmem:[%s1116_s3 + $0x1f0] sm:$0xff] }
   0xa   :  { %97 = vmatprep.subr.mxu0 %v25_v17  ;;  %168 = vmatprep.subr.mxu1 %v27_v18  ;;  %v260_v26 = vld [vmem:[%s1116_s3 + $0x178] sm:$0xff]  ;;  %v227_v30 = vld [vmem:[%s1116_s3 + $0x70] sm:$0xff]  ;;  %v425_v32 = vld [vmem:[%s1118_s5] sm:$0xff] }
   0xb   :  { %98 = vmatpush1.msra.mxu0 %v24_v19  ;;  %169 = vmatpush1.msra.mxu1 %v26_v20  ;;  %v259_v31 = vld [vmem:[%s1116_s3 + $0x170] sm:$0xff]  ;;  %v242_v33 = vld [vmem:[%s1116_s3 + $0xe8] sm:$0xff]  ;;  %v241_v37 = vld [vmem:[%s1116_s3 + $0xe0] sm:$0xff] }
   0xc   :  { %618 = vmatmul.mubr.msk.f32.vlgmr.msra.gmra.mxu0 %vm50_vm1, %v23_v21  ;;  %621 = vmatmul.mubr.msk.f32.vlgmr.msra.gmra.mxu1 %vm50_vm1, %v23_v21  ;;  %v274_v34 = vld [vmem:[%s1116_s3 + $0x1e8] sm:$0xff]  ;;  %v273_v38 = vld [vmem:[%s1116_s3 + $0x1e0] sm:$0xff]  ;;  %v428_v40 = vld [vmem:[%s1118_s5 + $0x18] sm:$0xff] }
   0xd   :  { %727 = vset.pattern.permute.xlu0 %v730_v27  ;;  %630 = vmatprep.subr.mxu0 %v244_v22  ;;  %v226_v35 = vld [vmem:[%s1116_s3 + $0x68] sm:$0xff]  ;;  %v225_v39 = vld [vmem:[%s1116_s3 + $0x60] sm:$0xff]  ;;  %v240_v42 = vld [vmem:[%s1116_s3 + $0xd8] sm:$0xff] }
   0xe   :  { %47 = vperm.xlu0 %727, %v44_v23   ;;  %665 = vmatprep.subr.mxu1 %v276_v24  ;;  %v258_v36 = vld [vmem:[%s1116_s3 + $0x168] sm:$0xff]  ;;  %v257_v41 = vld [vmem:[%s1116_s3 + $0x160] sm:$0xff]  ;;  %v272_v43 = vld [vmem:[%s1116_s3 + $0x1d8] sm:$0xff] }
   0xf   :  { %631 = vmatpush3.msra.mxu0 %v228_v25  ;;  %666 = vmatpush3.msra.mxu1 %v260_v26  ;;  %v224_v44 = vld [vmem:[%s1116_s3 + $0x58] sm:$0xff]  ;;  %v239_v46 = vld [vmem:[%s1116_s3 + $0xd0] sm:$0xff]  ;;  %v430_v48 = vld [vmem:[%s1118_s5 + $0x28] sm:$0xff] }
  0x10   :  { %632 = vmatprep.subr.mxu0 %v243_v28  ;;  %667 = vmatprep.subr.mxu1 %v275_v29  ;;  %v256_v45 = vld [vmem:[%s1116_s3 + $0x158] sm:$0xff]  ;;  %v271_v47 = vld [vmem:[%s1116_s3 + $0x1d0] sm:$0xff]  ;;  %v238_v51 = vld [vmem:[%s1116_s3 + $0xc8] sm:$0xff] }
  0x11   :  { %633 = vmatpush3.msra.mxu0 %v227_v30  ;;  %668 = vmatpush3.msra.mxu1 %v259_v31  ;;  %v223_v49 = vld [vmem:[%s1116_s3 + $0x50] sm:$0xff]  ;;  %v270_v52 = vld [vmem:[%s1116_s3 + $0x1c8] sm:$0xff]  ;;  %v237_v55 = vld [vmem:[%s1116_s3 + $0xc0] sm:$0xff] }
  0x12   :  { %435 = vperm.xlu0 %727, %v425_v32   ;;  %634 = vmatprep.subr.mxu0 %v242_v33  ;;  %v255_v50 = vld [vmem:[%s1116_s3 + $0x150] sm:$0xff]  ;;  %v222_v53 = vld [vmem:[%s1116_s3 + $0x48] sm:$0xff]  ;;  %v432_v56 = vld [vmem:[%s1118_s5 + $0x38] sm:$0xff] }
  0x13   :  { %669 = vmatprep.subr.mxu1 %v274_v34  ;;  %635 = vmatpush3.msra.mxu0 %v226_v35  ;;  %v254_v54 = vld [vmem:[%s1116_s3 + $0x148] sm:$0xff]  ;;  %v269_v57 = vld [vmem:[%s1116_s3 + $0x1c0] sm:$0xff]  ;;  %v236_v60 = vld [vmem:[%s1116_s3 + $0xb8] sm:$0xff] }
  0x14   :  { %670 = vmatpush3.msra.mxu1 %v258_v36  ;;  %636 = vmatprep.subr.mxu0 %v241_v37  ;;  %v221_v58 = vld [vmem:[%s1116_s3 + $0x40] sm:$0xff]  ;;  %v268_v61 = vld [vmem:[%s1116_s3 + $0x1b8] sm:$0xff]  ;;  %v235_v0 = vld [vmem:[%s1116_s3 + $0xb0] sm:$0xff] }
  0x15   :  { %671 = vmatprep.subr.mxu1 %v273_v38  ;;  %637 = vmatpush3.msra.mxu0 %v225_v39  ;;  %v253_v59 = vld [vmem:[%s1116_s3 + $0x140] sm:$0xff]  ;;  %v220_v62 = vld [vmem:[%s1116_s3 + $0x38] sm:$0xff]  ;;  %v267_v1 = vld [vmem:[%s1116_s3 + $0x1b0] sm:$0xff] }
  0x16   :  { %450 = vperm.xlu0 %727, %v428_v40   ;;  %672 = vmatpush3.msra.mxu1 %v257_v41  ;;  %v252_v63 = vld [vmem:[%s1116_s3 + $0x138] sm:$0xff]  ;;  %v219_v2 = vld [vmem:[%s1116_s3 + $0x30] sm:$0xff]  ;;  %v234_v4 = vld [vmem:[%s1116_s3 + $0xa8] sm:$0xff] }
  0x17   :  { %638 = vmatprep.subr.mxu0 %v240_v42  ;;  %673 = vmatprep.subr.mxu1 %v272_v43  ;;  %v251_v3 = vld [vmem:[%s1116_s3 + $0x130] sm:$0xff]  ;;  %v266_v5 = vld [vmem:[%s1116_s3 + $0x1a8] sm:$0xff]  ;;  %v233_v8 = vld [vmem:[%s1116_s3 + $0xa0] sm:$0xff] }
  0x18   :  { %639 = vmatpush3.msra.mxu0 %v224_v44  ;;  %674 = vmatpush3.msra.mxu1 %v256_v45  ;;  %v218_v6 = vld [vmem:[%s1116_s3 + $0x28] sm:$0xff]  ;;  %v265_v9 = vld [vmem:[%s1116_s3 + $0x1a0] sm:$0xff]  ;;  %v232_v12 = vld [vmem:[%s1116_s3 + $0x98] sm:$0xff] }
  0x19   :  { %640 = vmatprep.subr.mxu0 %v239_v46  ;;  %675 = vmatprep.subr.mxu1 %v271_v47  ;;  %v250_v7 = vld [vmem:[%s1116_s3 + $0x128] sm:$0xff]  ;;  %v217_v10 = vld [vmem:[%s1116_s3 + $0x20] sm:$0xff]  ;;  %v264_v13 = vld [vmem:[%s1116_s3 + $0x198] sm:$0xff] }
  0x1a   :  { %460 = vperm.xlu0 %727, %v430_v48   ;;  %641 = vmatpush3.msra.mxu0 %v223_v49  ;;  %v249_v11 = vld [vmem:[%s1116_s3 + $0x120] sm:$0xff]  ;;  %v216_v14 = vld [vmem:[%s1116_s3 + $0x18] sm:$0xff]  ;;  %v231_v16 = vld [vmem:[%s1116_s3 + $0x90] sm:$0xff] }
  0x1b   :  { %676 = vmatpush3.msra.mxu1 %v255_v50  ;;  %642 = vmatprep.subr.mxu0 %v238_v51  ;;  %v248_v15 = vld [vmem:[%s1116_s3 + $0x118] sm:$0xff]  ;;  %v263_v17 = vld [vmem:[%s1116_s3 + $0x190] sm:$0xff]  ;;  %v230_v20 = vld [vmem:[%s1116_s3 + $0x88] sm:$0xff] }
  0x1c   :  { %677 = vmatprep.subr.mxu1 %v270_v52  ;;  %643 = vmatpush3.msra.mxu0 %v222_v53  ;;  %v215_v18 = vld [vmem:[%s1116_s3 + $0x10] sm:$0xff]  ;;  %v262_v21 = vld [vmem:[%s1116_s3 + $0x188] sm:$0xff]  ;;  %v229_v24 = vld [vmem:[%s1116_s3 + $0x80] sm:$0xff] }
  0x1d   :  { %678 = vmatpush3.msra.mxu1 %v254_v54  ;;  %644 = vmatprep.subr.mxu0 %v237_v55  ;;  %v247_v19 = vld [vmem:[%s1116_s3 + $0x110] sm:$0xff]  ;;  %v214_v22 = vld [vmem:[%s1116_s3 + $0x8] sm:$0xff]  ;;  %v261_v25 = vld [vmem:[%s1116_s3 + $0x180] sm:$0xff] }
  0x1e   :  { %470 = vperm.xlu0 %727, %v432_v56   ;;  %679 = vmatprep.subr.mxu1 %v269_v57  ;;  %v246_v23 = vld [vmem:[%s1116_s3 + $0x108] sm:$0xff]  ;;  %v213_v26 = vld [vmem:[%s1116_s3] sm:$0xff]  ;;  %v427_v44 = vld [vmem:[%s1118_s5 + $0x10] sm:$0xff] }
  0x1f   :  { %645 = vmatpush3.msra.mxu0 %v221_v58  ;;  %680 = vmatpush3.msra.mxu1 %v253_v59  ;;  %v417_v41 = vld [vmem:[%s1119_s4] sm:$0xff]  ;;  %v426_v43 = vld [vmem:[%s1118_s5 + $0x8] sm:$0xff]  ;;  %v431_v46 = vld [vmem:[%s1118_s5 + $0x30] sm:$0xff] }
  0x20   :  { %646 = vmatprep.subr.mxu0 %v236_v60  ;;  %681 = vmatprep.subr.mxu1 %v268_v61  ;;  %v421_v42 = vld [vmem:[%s1119_s4 + $0x20] sm:$0xff]  ;;  %v418_v54 = vld [vmem:[%s1119_s4 + $0x8] sm:$0xff]  ;;  %v419_v56 = vld [vmem:[%s1119_s4 + $0x10] sm:$0xff] }
  0x21   :  { %647 = vmatpush3.msra.mxu0 %v220_v62  ;;  %682 = vmatpush3.msra.mxu1 %v252_v63  ;;  %v429_v45 = vld [vmem:[%s1118_s5 + $0x20] sm:$0xff]  ;;  %v422_v55 = vld [vmem:[%s1119_s4 + $0x28] sm:$0xff]  ;;  %v423_v57 = vld [vmem:[%s1119_s4 + $0x30] sm:$0xff] }
  0x22   :  { %648 = vmatprep.subr.mxu0 %v235_v0  ;;  %683 = vmatprep.subr.mxu1 %v267_v1  ;;  %v420_v58 = vld [vmem:[%s1119_s4 + $0x18] sm:$0xff] }
  0x23   :  { %649 = vmatpush3.msra.mxu0 %v219_v2  ;;  %684 = vmatpush3.msra.mxu1 %v251_v3  ;;  %v424_v59 = vld [vmem:[%s1119_s4 + $0x38] sm:$0xff] }
  0x24   :  { %650 = vmatprep.subr.mxu0 %v234_v4  ;;  %685 = vmatprep.subr.mxu1 %v266_v5 }
  0x25   :  { %651 = vmatpush3.msra.mxu0 %v218_v6  ;;  %686 = vmatpush3.msra.mxu1 %v250_v7 }
  0x26   :  { %652 = vmatprep.subr.mxu0 %v233_v8  ;;  %687 = vmatprep.subr.mxu1 %v265_v9 }
  0x27   :  { %653 = vmatpush3.msra.mxu0 %v217_v10  ;;  %688 = vmatpush3.msra.mxu1 %v249_v11 }
  0x28   :  { %728 = vset.pattern.permute.xlu1 %v730_v27  ;;  %654 = vmatprep.subr.mxu0 %v232_v12  ;;  %v245_v27 = vld [vmem:[%s1116_s3 + $0x100] sm:$0xff] }
  0x29   :  { %689 = vmatprep.subr.mxu1 %v264_v13  ;;  %655 = vmatpush3.msra.mxu0 %v216_v14 }
  0x2a   :  { %690 = vmatpush3.msra.mxu1 %v248_v15  ;;  %656 = vmatprep.subr.mxu0 %v231_v16 }
  0x2b   :  { %691 = vmatprep.subr.mxu1 %v263_v17  ;;  %657 = vmatpush3.msra.mxu0 %v215_v18 }
  0x2c   :  { %692 = vmatpush3.msra.mxu1 %v247_v19  ;;  %658 = vmatprep.subr.mxu0 %v230_v20 }
  0x2d   :  { %693 = vmatprep.subr.mxu1 %v262_v21  ;;  %659 = vmatpush3.msra.mxu0 %v214_v22 }
  0x2e   :  { %694 = vmatpush3.msra.mxu1 %v246_v23  ;;  %660 = vmatprep.subr.mxu0 %v229_v24 }
  0x2f   :  { %695 = vmatprep.subr.mxu1 %v261_v25  ;;  %661 = vmatpush3.msra.mxu0 %v213_v26 }
  0x30   :  { %696 = vmatpush3.msra.mxu1 %v245_v27  ;;  %440 = vperm.xlu1 %728, %v426_v43  }
  0x34   :  { %445 = vperm.xlu1 %728, %v427_v44  }
  0x38   :  { %455 = vperm.xlu1 %728, %v429_v45  }
  0x3c   :  { %465 = vperm.xlu1 %728, %v431_v46  }
  0x89   :  { %v48_v30 = vpop.permute.xlu0 %47 }
  0x8d   :  { %v436_v60 = vpop.permute.xlu0 %435 }
  0x91   :  { %v451_v62 = vpop.permute.xlu0 %450 }
  0x95   :  { %v461_v0 = vpop.permute.xlu0 %460 }
  0x99   :  { %v471_v8 = vpop.permute.xlu0 %470 }
  0xab   :  { %v441_v61 = vpop.permute.xlu1 %440 }
  0xaf   :  { %v446_v63 = vpop.permute.xlu1 %445 }
  0xb3   :  { %v456_v1 = vpop.permute.xlu1 %455 }
  0xb7   :  { %v466_v13 = vpop.permute.xlu1 %465 }
  0xcc   :  { %v133_v28 = vpop.f32.mrf.mxu0  ;;  %v204_v29 = vpop.f32.mrf.mxu1 }
  0xcd   :  { %v134_v31 = vadd.f32 %v133_v28, %v48_v30  ;;  %v205_v32 = vadd.f32 %v204_v29, %v48_v30 }
  0xce   :  { %v135_v33 = vpop.f32.mrf.mxu0  ;;  %v206_v34 = vpop.f32.mrf.mxu1 }
  0xcf   :  { %v136_v35 = vadd.f32 %v135_v33, %v48_v30  ;;  %v207_v36 = vadd.f32 %v206_v34, %v48_v30  ;;  %v209_v39 = vmax.f32 %v134_v31, 0.0  ;;  %v211_v40 = vmax.f32 %v205_v32, 0.0 }
  0xd1   :  { %v210_v37 = vmax.f32 %v136_v35, 0.0  ;;  %v212_v38 = vmax.f32 %v207_v36, 0.0 }
  0xd3   :  { %341 = vmatprep.mubr.f32.mxu0 %v210_v37  ;;  %411 = vmatprep.mubr.f32.mxu1 %v212_v38 }
  0xd4   :  { %342 = vmatmul.mubr.f32.vlgmr.msra.gmra.mxu0 %v209_v39  ;;  %412 = vmatmul.mubr.f32.vlgmr.msra.gmra.mxu1 %v211_v40 }
  0xd5   :  { %711 = vmatprep.mubr.msk.f32.mxu0 %vm473_vm2, %v417_v41  ;;  %717 = vmatprep.mubr.msk.f32.mxu1 %vm473_vm2, %v421_v42 }
 0x194   :  { %v662_v47 = vpop.f32.mrf.mxu0  ;;  %v697_v48 = vpop.f32.mrf.mxu1 }
 0x196   :  { %v663_v49 = vpop.f32.mrf.mxu0  ;;  %v698_v50 = vpop.f32.mrf.mxu1 }
 0x197   :  { %v664_v51 = vadd.f32 %v663_v49, %v662_v47  ;;  %v699_v52 = vadd.f32 %v698_v50, %v697_v48 }
 0x199   :  { %v414_v53 = vadd.f32 %v699_v52, %v664_v51 }
 0x19b   :  { %709 = vmatprep.subr.mxu0 %v414_v53  ;;  %723 = vmatprep.subr.mxu1 %v414_v53 }
 0x19c   :  { %710 = vmatpush3.msra.mxu0 %v414_v53  ;;  %724 = vmatpush3.msra.mxu1 %v414_v53 }
 0x19d   :  { %712 = vmatmul.mubr.msk.f32.vlgmr.msra.gmra.mxu0 %vm473_vm2, %v418_v54  ;;  %718 = vmatmul.mubr.msk.f32.vlgmr.msra.gmra.mxu1 %vm473_vm2, %v422_v55 }
 0x19e   :  { %714 = vmatprep.mubr.msk.f32.mxu0 %vm473_vm2, %v419_v56  ;;  %720 = vmatprep.mubr.msk.f32.mxu1 %vm473_vm2, %v423_v57 }
 0x1a1   :  { %715 = vmatmul.mubr.msk.f32.gmra.mxu0 %vm473_vm2, %v420_v58  ;;  %721 = vmatmul.mubr.msk.f32.gmra.mxu1 %vm473_vm2, %v424_v59 }
 0x25d   :  { %v713_v2 = vpop.f32.mrf.mxu0  ;;  %v719_v3 = vpop.f32.mrf.mxu1 }
 0x25e   :  { %v570_v4 = vadd.f32 %v713_v2, %v441_v61  ;;  %v590_v5 = vadd.f32 %v719_v3, %v461_v0 }
 0x25f   :  { %v564_v6 = vpop.f32.mrf.mxu0  ;;  %v584_v7 = vpop.f32.mrf.mxu1 }
 0x260   :  { %605 = vst.msk [vmem:[%s1120_s6 + $0x8] sm:$0xff] %vm603_vm3, %v570_v4  ;;  %609 = vst.msk [vmem:[%s1120_s6 + $0x28] sm:$0xff] %vm603_vm3, %v590_v5  ;;  %v565_v9 = vadd.f32 %v564_v6, %v436_v60  ;;  %v585_v10 = vadd.f32 %v584_v7, %v456_v1 }
 0x261   :  { %v716_v11 = vpop.f32.mrf.mxu0  ;;  %v722_v12 = vpop.f32.mrf.mxu1 }
 0x262   :  { %604 = vst.msk [vmem:[%s1120_s6] sm:$0xff] %vm603_vm3, %v565_v9  ;;  %608 = vst.msk [vmem:[%s1120_s6 + $0x20] sm:$0xff] %vm603_vm3, %v585_v10  ;;  %v580_v14 = vadd.f32 %v716_v11, %v451_v62  ;;  %v600_v15 = vadd.f32 %v722_v12, %v471_v8 }
 0x263   :  { %v574_v16 = vpop.f32.mrf.mxu0  ;;  %v594_v17 = vpop.f32.mrf.mxu1 }
 0x264   :  { %607 = vst.msk [vmem:[%s1120_s6 + $0x18] sm:$0xff] %vm603_vm3, %v580_v14  ;;  %611 = vst.msk [vmem:[%s1120_s6 + $0x38] sm:$0xff] %vm603_vm3, %v600_v15  ;;  %v575_v18 = vadd.f32 %v574_v16, %v446_v63  ;;  %v595_v19 = vadd.f32 %v594_v17, %v466_v13 }
 0x266   :  { %606 = vst.msk [vmem:[%s1120_s6 + $0x10] sm:$0xff] %vm603_vm3, %v575_v18  ;;  %610 = vst.msk [vmem:[%s1120_s6 + $0x30] sm:$0xff] %vm603_vm3, %v595_v19 }

</bundles_post_ra>
